<compile_context>
chip_gen: v7x
topology: tpu7x:2x2x1
jax: 0.10.0
libtpu: 0.0.40
codegen_flags: <defaults>
</compile_context>

<pallas_src>
import functools

import jax
import jax.numpy as jnp
from jax.experimental import pallas as pl
from jax.experimental.pallas import tpu as pltpu

LANE = 128


def _linear_kernel(x_ref, w_ref, b_ref, o_ref):
    # x_ref: (Bt, F) f32 | w_ref: (Cp, F) bf16 | b_ref: (1, Cp) f32 | o_ref: (Bt, Cp) f32
    x = x_ref[...].astype(jnp.bfloat16)
    w = w_ref[...].astype(jnp.bfloat16)
    # y = x @ W.T as a dot_general contracting on F for both operands
    # ("trans_b" form) -- no transpose materialized anywhere, f32 MXU accumulation.
    acc = jax.lax.dot_general(
        x, w,
        dimension_numbers=(((1,), (1,)), ((), ())),
        preferred_element_type=jnp.float32,
    )
    o_ref[...] = (acc + b_ref[...]).astype(o_ref.dtype)


def prepare_linear_params(weight, bias):
    """One-time (init) layout prep: pad the class dim to a lane-dense multiple of
    128 and store the weight in bf16 (accumulation stays f32 in the kernel)."""
    C, F = weight.shape
    Cp = LANE * pl.cdiv(C, LANE)
    w_pad = jnp.zeros((Cp, F), jnp.bfloat16).at[:C, :].set(weight.astype(jnp.bfloat16))
    b_pad = jnp.zeros((1, Cp), jnp.float32).at[0, :C].set(bias.astype(jnp.float32))
    return w_pad, b_pad


@functools.partial(jax.jit, static_argnames=("n_classes", "block_b"))
def linear_forward(x, w_pad, b_pad, *, n_classes, block_b=1024):
    """x: (B, F) f32; w_pad: (Cp, F) bf16; b_pad: (1, Cp) f32 -> (B, n_classes) f32."""
    B, F = x.shape
    Cp = w_pad.shape[0]
    out_shape = jax.ShapeDtypeStruct((B, Cp), x.dtype)

    if B > block_b and B % block_b == 0:
        # Large batch: row-tile x/out; whole (small) weight + bias stay resident.
        out = pl.pallas_call(
            _linear_kernel,
            out_shape=out_shape,
            grid=(B // block_b,),
            in_specs=[
                pl.BlockSpec((block_b, F), lambda i: (i, 0)),
                pl.BlockSpec((Cp, F), lambda i: (0, 0)),
                pl.BlockSpec((1, Cp), lambda i: (0, 0)),
            ],
            out_specs=pl.BlockSpec((block_b, Cp), lambda i: (i, 0)),
            compiler_params=pltpu.CompilerParams(
                dimension_semantics=("parallel",)),
        )(x, w_pad, b_pad)
    else:
        # Small batch (the case here): single invocation, whole arrays in VMEM,
        # no 1-point grid / pipeline bookkeeping.
        out = pl.pallas_call(
            _linear_kernel,
            out_shape=out_shape,
            in_specs=[
                pl.BlockSpec(memory_space=pltpu.MemorySpace.VMEM),
                pl.BlockSpec(memory_space=pltpu.MemorySpace.VMEM),
                pl.BlockSpec(memory_space=pltpu.MemorySpace.VMEM),
            ],
            out_specs=pl.BlockSpec(memory_space=pltpu.MemorySpace.VMEM),
        )(x, w_pad, b_pad)

    # Drop the lane padding (cheap slice; the padding itself was done at init).
    return out[:, :n_classes]


if __name__ == "__main__":
    n_features, n_classes = 613, 8
    batch = 8

    key = jax.random.PRNGKey(0)
    kx, kw, kb = jax.random.split(key, 3)

    # nn.Linear-style init: uniform(-1/sqrt(F), 1/sqrt(F))
    bound = 1.0 / (n_features ** 0.5)
    weight = jax.random.uniform(kw, (n_classes, n_features), jnp.float32, -bound, bound)
    bias = jax.random.uniform(kb, (n_classes,), jnp.float32, -bound, bound)
    x = jax.random.normal(kx, (batch, n_features), jnp.float32)

    w_pad, b_pad = prepare_linear_params(weight, bias)

    out = linear_forward(x, w_pad, b_pad, n_classes=n_classes)
    jax.block_until_ready(out)
    assert out.shape == (batch, n_classes)

    # Tight check against a reference with matching bf16 inputs / f32 accumulation.
    ref_bf16 = jnp.dot(x.astype(jnp.bfloat16), weight.astype(jnp.bfloat16).T,
                       preferred_element_type=jnp.float32) + bias
    assert jnp.allclose(out, ref_bf16, atol=1e-3, rtol=1e-3)

    # Loose check against the exact f32 PyTorch-semantics reference
    # (bf16 MXU inputs introduce ~1e-3-level error over K=613).
    ref_f32 = x @ weight.T + bias
    assert jnp.allclose(out, ref_f32, atol=5e-2, rtol=5e-2)

    print("KERNEL_OK")
</pallas_src>

<mosaic_0001>
module attributes {stable_mosaic.version = 11 : i64} {
  func.func @_linear_kernel(%arg0: memref<8x613xf32, #tpu.memory_space<vmem>>, %arg1: memref<128x613xbf16, #tpu.memory_space<vmem>>, %arg2: memref<1x128xf32, #tpu.memory_space<vmem>>, %arg3: memref<8x128xf32, #tpu.memory_space<vmem>>) attributes {dimension_semantics = [], scalar_prefetch = 0 : i64, scratch_operands = 0 : i64, tpu.core_type = #tpu.core_type<tc>} {
    %c0 = arith.constant 0 : index
    %c0_0 = arith.constant 0 : index
    %0 = vector.load %arg0[%c0, %c0_0] : memref<8x613xf32, #tpu.memory_space<vmem>>, vector<8x613xf32>
    %1 = arith.truncf %0 : vector<8x613xf32> to vector<8x613xbf16>
    %c0_1 = arith.constant 0 : index
    %c0_2 = arith.constant 0 : index
    %2 = vector.load %arg1[%c0_1, %c0_2] : memref<128x613xbf16, #tpu.memory_space<vmem>>, vector<128x613xbf16>
    %cst = arith.constant dense<0.000000e+00> : vector<8x128xf32>
    %3 = tpu.matmul %1, %2, %cst {dimension_numbers = #tpu.dot_dimension_numbers<[1], [1], [0], [0], [0, 0, 1, 0], [], []>} : vector<8x613xbf16>, vector<128x613xbf16>, vector<8x128xf32> -> vector<8x128xf32>
    %c0_3 = arith.constant 0 : index
    %c0_4 = arith.constant 0 : index
    %4 = vector.load %arg2[%c0_3, %c0_4] : memref<1x128xf32, #tpu.memory_space<vmem>>, vector<1x128xf32>
    %5 = vector.broadcast %4 : vector<1x128xf32> to vector<8x128xf32>
    %6 = arith.addf %3, %5 : vector<8x128xf32>
    %c0_5 = arith.constant 0 : index
    %c0_6 = arith.constant 0 : index
    %7 = vector.load %arg3[%c0_5, %c0_6] : memref<8x128xf32, #tpu.memory_space<vmem>>, vector<8x128xf32>
    tpu.vector_store %arg3[%c0_5, %c0_6], %6 {strides = array<i32>} : memref<8x128xf32, #tpu.memory_space<vmem>>, vector<8x128xf32>,
    return
  }
}

</mosaic_0001>

<bundles_post_ra>
// kernel: linear_forward.1
= control target key start
LH: loop header
LB: loop body
LE: loop exit
PB: predicated region body
PF: predicated region fallthrough
CT: control target
= control target key end

     0   :  { %s786_s0 = inlined_call_operand.vmem [shape: f32[8,613], index: 0, kind: input, shape index: {}]   ;;  %s787_s1 = inlined_call_operand.vmem [shape: bf16[128,613], index: 1, kind: input, shape index: {}]   ;;  %s788_s2 = inlined_call_operand.vmem [shape: f32[1,128], index: 2, kind: input, shape index: {}]   ;;  %s789_s3 = inlined_call_operand.hbm [shape: f32[8,128], index: 3, kind: output, shape index: {}]  }
   0x1   :  { %v524_v0 = vld [vmem:[%s787_s1 + $0xc] ss:$20 sps:$4 sm:$0xff]   ;;  %v526_v1 = vld [vmem:[%s787_s1 + $0x8] ss:$20 sps:$4 sm:$0xff]   ;;  %v529_v3 = vld [vmem:[%s787_s1 + $0x30] ss:$20 sps:$4 sm:$0xff]  }
   0x2   :  { %349 = vmatprep.subr.bf16.mxu0 %v524_v0  ;;  %v527_v2 = vld [vmem:[%s787_s1 + $0x34] ss:$20 sps:$4 sm:$0xff]   ;;  %v530_v4 = vld [vmem:[%s787_s1 + $0x5c] ss:$20 sps:$4 sm:$0xff]   ;;  %v548_v5 = vld [vmem:[%s787_s1 + $0x4] ss:$20 sps:$4 sm:$0xff]  }
   0x3   :  { %350 = vmatpush1.bf16.xpose.msra.mxu0 %v526_v1  ;;  %v550_v6 = vld [vmem:[%s787_s1] ss:$20 sps:$4 sm:$0xff]   ;;  %v19_v7 = vld [vmem:[%s786_s0 + $0x18] sm:$0xff]  ;;  %309 = vmatprep.subr.bf16.mxu1 %v548_v5  ;;  %v558_v16 = vld [vmem:[%s787_s1 + $0x50] ss:$20 sps:$4 sm:$0xff]  }
   0x4   :  { %351 = vmatprep.subr.bf16.mxu0 %v527_v2  ;;  %v24_v8 = vpack.c.bf16 %v19_v7, %v19_v7  ;;  %v532_v9 = vld [vmem:[%s787_s1 + $0x58] ss:$20 sps:$4 sm:$0xff]   ;;  %310 = vmatpush1.bf16.xpose.msra.mxu1 %v550_v6  ;;  %v554_v12 = vld [vmem:[%s787_s1 + $0x28] ss:$20 sps:$4 sm:$0xff]   ;;  %v535_v14 = vld [vmem:[%s787_s1 + $0x80] ss:$20 sps:$4 sm:$0xff]  }
   0x5   :  { %v552_v10 = vld [vmem:[%s787_s1 + $0x2c] ss:$20 sps:$4 sm:$0xff]   ;;  %v533_v11 = vld [vmem:[%s787_s1 + $0x84] ss:$20 sps:$4 sm:$0xff]   ;;  %v556_v13 = vld [vmem:[%s787_s1 + $0x54] ss:$20 sps:$4 sm:$0xff]  }
   0x6   :  { %381 = vmatprep.mubr.bf16.mxu0 %v24_v8  ;;  %311 = vmatprep.subr.bf16.mxu1 %v552_v10  ;;  %v536_v15 = vld [vmem:[%s787_s1 + $0xac] ss:$20 sps:$4 sm:$0xff]   ;;  %v560_v17 = vld [vmem:[%s787_s1 + $0x7c] ss:$20 sps:$4 sm:$0xff]  }
   0x7   :  { %v17_v18 = vld [vmem:[%s786_s0 + $0x8] sm:$0xff] }
   0x8   :  { %v22_v19 = vpack.c.bf16 %v17_v18, %v17_v18  ;;  %v538_v20 = vld [vmem:[%s787_s1 + $0xa8] ss:$20 sps:$4 sm:$0xff]  }
   0xb   :  { %352 = vmatpush1.bf16.xpose.msra.mxu0 %v529_v3 }
   0xc   :  { %353 = vmatprep.subr.bf16.mxu0 %v530_v4  ;;  %312 = vmatpush1.bf16.xpose.msra.mxu1 %v554_v12 }
   0xd   :  { %313 = vmatprep.subr.bf16.mxu1 %v556_v13 }
  0x13   :  { %354 = vmatpush1.bf16.xpose.msra.mxu0 %v532_v9 }
  0x14   :  { %355 = vmatprep.subr.bf16.mxu0 %v533_v11  ;;  %314 = vmatpush1.bf16.xpose.msra.mxu1 %v558_v16 }
  0x15   :  { %315 = vmatprep.subr.bf16.mxu1 %v560_v17 }
  0x1b   :  { %356 = vmatpush1.bf16.xpose.msra.mxu0 %v535_v14 }
  0x1c   :  { %357 = vmatprep.subr.bf16.mxu0 %v536_v15 }
  0x1d   :  { %8 = vsyncpa [#allocation3], 0  ;;  %v539_v21 = vld [vmem:[%s787_s1 + $0xd4] ss:$20 sps:$4 sm:$0xff]   ;;  %341 = vmatprep.mubr.bf16.mxu1 %v22_v19  ;;  %v562_v22 = vld [vmem:[%s787_s1 + $0x78] ss:$20 sps:$4 sm:$0xff]  }
  0x1e   :  { %v564_v23 = vld [vmem:[%s787_s1 + $0xa4] ss:$20 sps:$4 sm:$0xff]   ;;  %316 = vmatpush1.bf16.xpose.msra.mxu1 %v562_v22  ;;  %v542_v25 = vld [vmem:[%s787_s1 + $0xfc] ss:$20 sps:$4 sm:$0xff]   ;;  %v566_v26 = vld [vmem:[%s787_s1 + $0xa0] ss:$20 sps:$4 sm:$0xff]  }
  0x1f   :  { %v541_v24 = vld [vmem:[%s787_s1 + $0xd0] ss:$20 sps:$4 sm:$0xff]   ;;  %317 = vmatprep.subr.bf16.mxu1 %v564_v23  ;;  %v568_v27 = vld [vmem:[%s787_s1 + $0xcc] ss:$20 sps:$4 sm:$0xff]   ;;  %v570_v30 = vld [vmem:[%s787_s1 + $0xc8] ss:$20 sps:$4 sm:$0xff]  }
  0x20   :  { %v544_v28 = vld [vmem:[%s787_s1 + $0xf8] ss:$20 sps:$4 sm:$0xff]   ;;  %v572_v31 = vld [vmem:[%s787_s1 + $0xf4] ss:$20 sps:$4 sm:$0xff]   ;;  %v574_v33 = vld [vmem:[%s787_s1 + $0xf0] ss:$20 sps:$4 sm:$0xff]  }
  0x21   :  { %v545_v29 = vld [vmem:[%s787_s1 + $0x124] ss:$20 sps:$4 sm:$0xff]   ;;  %v547_v32 = vld [vmem:[%s787_s1 + $0x120] ss:$20 sps:$4 sm:$0xff]   ;;  %v576_v35 = vld [vmem:[%s787_s1 + $0x11c] ss:$20 sps:$4 sm:$0xff]  }
  0x22   :  { %v18_v34 = vld [vmem:[%s786_s0 + $0x10] sm:$0xff]  ;;  %v604_v36 = vmov 0.0   ;;  %vm281_vm0 = vcmask 826368   ;;  %v578_v40 = vld [vmem:[%s787_s1 + $0x118] ss:$20 sps:$4 sm:$0xff]   ;;  %vm605_vm1 = vmmov 0  }
  0x23   :  { %358 = vmatpush1.bf16.xpose.msra.mxu0 %v538_v20  ;;  %v551_v37 = vld [vmem:[%s787_s1 + $0x10] ss:$20 sps:$4 sm:$0xff]   ;;  %v23_v38 = vpack.c.bf16 %v18_v34, %v18_v34  ;;  %v555_v41 = vld [vmem:[%s787_s1 + $0x38] ss:$20 sps:$4 sm:$0xff]   ;;  %v559_v45 = vld [vmem:[%s787_s1 + $0x60] ss:$20 sps:$4 sm:$0xff]  }
  0x24   :  { %359 = vmatprep.subr.bf16.mxu0 %v539_v21  ;;  %v286_v39 = vsel %vm281_vm0, %v551_v37, 0  ;;  %v16_v42 = vld [vmem:[%s786_s0] sm:$0xff]  ;;  %v289_v43 = vsel %vm281_vm0, %v555_v41, 0  ;;  %v292_v46 = vsel %vm281_vm0, %v559_v45, 0  ;;  %v563_v47 = vld [vmem:[%s787_s1 + $0x88] ss:$20 sps:$4 sm:$0xff]  }
  0x25   :  { %v21_v44 = vpack.c.bf16 %v16_v42, %v16_v42  ;;  %v295_v48 = vsel %vm281_vm0, %v563_v47, 0  ;;  %v567_v49 = vld [vmem:[%s787_s1 + $0xb0] ss:$20 sps:$4 sm:$0xff]   ;;  %v571_v51 = vld [vmem:[%s787_s1 + $0xd8] ss:$20 sps:$4 sm:$0xff]  }
  0x26   :  { %318 = vmatpush1.bf16.xpose.msra.mxu1 %v566_v26  ;;  %v298_v50 = vsel %vm281_vm0, %v567_v49, 0  ;;  %v301_v52 = vsel %vm281_vm0, %v571_v51, 0  ;;  %v575_v53 = vld [vmem:[%s787_s1 + $0x100] ss:$20 sps:$4 sm:$0xff]   ;;  %v579_v55 = vld [vmem:[%s787_s1 + $0x128] ss:$20 sps:$4 sm:$0xff]  }
  0x27   :  { %319 = vmatprep.subr.bf16.mxu1 %v568_v27  ;;  %v304_v54 = vsel %vm281_vm0, %v575_v53, 0  ;;  %v307_v56 = vsel %vm281_vm0, %v579_v55, 0  ;;  %v20_v57 = vld [vmem:[%s786_s0 + $0x20] sm:$0xff]  ;;  %s606_s1 = smov [#allocation2]  }
  0x28   :  { %v25_v58 = vpack.c.bf16 %v20_v57, %v20_v57  ;;  %v444_v63 = vld [vmem:[%s788_s2] ss:$0 sm:$0xff]  ;;  %s436_s23 = sshll.u32 %s606_s1, 4  ;;  %s437_s23 = int_to_ptr.vmem [resolvable:$true] %s436_s23 }
  0x29   :  { %s580_s0 = scalar_lea.vmem %s437_s23, 128  ;;  %p585_p1 = scmp.lt.s32.totalorder %s437_s23, %s437_s23 }
  0x2a   :  { %p581_p0 = scmp.ne.s32.totalorder %s437_s23, %s580_s0  ;;  %p586_p2 = scmp.lt.s32.totalorder %s580_s0, %s580_s0 }
  0x2b   :  { %360 = vmatpush1.bf16.xpose.msra.mxu0 %v541_v24 }
  0x2c   :  { %361 = vmatprep.subr.bf16.mxu0 %v542_v25  ;;  %p587_p3 = por %p586_p2, %p585_p1 }
  0x2e   :  { %320 = vmatpush1.bf16.xpose.msra.mxu1 %v570_v30  ;;  %p588_p4 = pnand %p587_p3, %p581_p0 }
  0x2f   :  { %321 = vmatprep.subr.bf16.mxu1 %v572_v31 }
  0x33   :  { %362 = vmatpush1.bf16.xpose.msra.mxu0 %v544_v28 }
  0x34   :  { %363 = vmatprep.subr.bf16.mxu0 %v545_v29 }
  0x36   :  { %322 = vmatpush1.bf16.xpose.msra.mxu1 %v574_v33 }
  0x37   :  { %323 = vmatprep.subr.bf16.mxu1 %v576_v35 }
  0x3b   :  { %364 = vmatpush1.bf16.xpose.msra.mxu0 %v547_v32 }
  0x3c   :  { %495 = vmatprep.subr.bf16.mxu0 %v604_v36 }
  0x3e   :  { %324 = vmatpush1.bf16.xpose.msra.mxu1 %v578_v40 }
  0x42   :  { %382 = vmatmul.mubr.bf16.vlgmr.msra.gmra.mrb[0].mxu0 %v23_v38 }
  0x43   :  { %496 = vmatpush3.bf16.xpose.msra.mxu0 %v286_v39  ;;  %511 = vmatprep.mubr.msk.bf16.mxu0 %vm605_vm1, %v604_v36 }
  0x44   :  { %497 = vmatprep.subr.bf16.mxu0 %v604_v36 }
  0x45   :  { %342 = vmatmul.mubr.bf16.vlgmr.msra.gmra.mrb[0].mxu1 %v21_v44 }
  0x4b   :  { %498 = vmatpush3.bf16.xpose.msra.mxu0 %v289_v43 }
  0x4c   :  { %499 = vmatprep.subr.bf16.mxu0 %v604_v36 }
  0x53   :  { %500 = vmatpush3.bf16.xpose.msra.mxu0 %v292_v46 }
  0x54   :  { %501 = vmatprep.subr.bf16.mxu0 %v604_v36 }
  0x5b   :  { %502 = vmatpush3.bf16.xpose.msra.mxu0 %v295_v48 }
  0x5c   :  { %503 = vmatprep.subr.bf16.mxu0 %v604_v36 }
  0x63   :  { %504 = vmatpush3.bf16.xpose.msra.mxu0 %v298_v50 }
  0x64   :  { %505 = vmatprep.subr.bf16.mxu0 %v604_v36 }
  0x6b   :  { %506 = vmatpush3.bf16.xpose.msra.mxu0 %v301_v52 }
  0x6c   :  { %507 = vmatprep.subr.bf16.mxu0 %v604_v36 }
  0x73   :  { %508 = vmatpush3.bf16.xpose.msra.mxu0 %v304_v54 }
  0x74   :  { %509 = vmatprep.subr.bf16.mxu0 %v604_v36 }
  0x7b   :  { %510 = vmatpush3.bf16.xpose.msra.mxu0 %v307_v56 }
  0x82   :  { %512 = vmatmul.mubr.msk.bf16.vlgmr.msra.gmra.mrb[0].mxu0 %vm281_vm0, %v25_v58 }
 0x118   :  { %v343_v59 = vpop.f32.mrb[0].mxu1 }
 0x119   :  { %v345_v60 = vpop.f32.mrb[1].mxu1  ;;  %v344_v0 = vadd.f32 %v444_v63, %v343_v59 }
 0x11a   :  { %v346_v61 = vpop.f32.mrb[2].mxu1 }
 0x11b   :  { %v347_v62 = vpop.f32.mrb[3].mxu1 }
 0x155   :  { %v423_v1 = vpop.f32.mrb[0].mxu0 }
 0x156   :  { %v516_v2 = vadd.f32 %v423_v1, %v344_v0  ;;  %v513_v3 = vpop.f32.mrb[1].mxu0 }
 0x157   :  { %v426_v4 = vpop.f32.mrb[2].mxu0 }
 0x158   :  { %429 = vst [vmem:[#allocation2] sm:$0xff] %v516_v2  ;;  %v514_v5 = vpop.f32.mrb[3].mxu0 }
 0x159   :  { %591 = shalt.err (!%p588_p4)
}
 0x15a   :  { %s592_s2 = scalar_lea.hbm %s789_s3, 128 }
 0x15b   :  { %p593_p5 = scmp.ne.s32.totalorder %s789_s3, %s592_s2  ;;  %p596_p6 = scmp.lt.u32.totalorder %s592_s2, %s789_s3 }
 0x15d   :  { %p598_p7 = pnand %p596_p6, %p593_p5 }
 0x15f   :  { %601 = shalt.err (!%p598_p7)
}
 0x160   :  { %439 = dma.vmem_to_hbm [thread:$0]  %s437_s23, 128, %s789_s3, [#allocation3]  }
 0x161   :  { %602 = dma.done.wait [#allocation3], 128  }
 0x162   :  { %603 = vsyncadd [#allocation3], 4294967168 }
 0x163   :  { %443 = vsyncpa [#allocation3], 1 }

</bundles_post_ra>
